<compile_context>
chip_gen: v5e
topology: v5e:2x2
jax: 0.10.0
libtpu: 0.0.40
codegen_flags: <defaults>
</compile_context>

<pallas_src>
import functools
import math

import jax
import jax.numpy as jnp
from jax.experimental import pallas as pl
from jax.experimental.pallas import tpu as pltpu


def _layer_scale_kernel(x_ref, g_ref, o_ref):
    # Multiply in gamma's dtype (f32, or the native 16-bit dtype on v6e/v7x);
    # cast back to the output dtype.  astype is a no-op when dtypes match.
    g = g_ref[...]
    o_ref[...] = (x_ref[...].astype(g.dtype) * g).astype(o_ref.dtype)


def _round_up(x: int, m: int) -> int:
    return (x + m - 1) // m * m


@functools.lru_cache(maxsize=None)
def _device_kind() -> str:
    try:
        return jax.devices()[0].device_kind.lower()
    except Exception:
        return ""


@functools.lru_cache(maxsize=None)
def _budgets():
    """(per-step x-tile bytes, scoped vmem_limit_bytes), generation-aware."""
    # Fallback is safe on every generation (2 bufs x (in+out) x 8 MiB = 32 MiB).
    tile, limit = 8 * 1024 * 1024, 48 * 1024 * 1024
    try:
        info = pltpu.get_tpu_info()
        cap = getattr(info, "vmem_capacity_bytes", None)
        if cap:
            if cap >= 100 * 1024 * 1024:        # v5e / v6e: 128 MiB physical VMEM
                tile, limit = 8 * 1024 * 1024, 64 * 1024 * 1024
            else:                               # v7x: 64 MiB physical VMEM
                # 2 bufs x (in+out) x 10 MiB = 40 MiB < 48 MiB scoped limit.
                tile, limit = 10 * 1024 * 1024, 48 * 1024 * 1024
    except Exception:
        pass
    return tile, limit


def _compute_dtype(x_dtype):
    dt = jnp.dtype(x_dtype)
    if dt in (jnp.dtype(jnp.bfloat16), jnp.dtype(jnp.float16)):
        # v6e / v7x VPUs execute 16-bit math natively -> skip the f32 round-trip.
        # v5 lacks 16-bit VALU, keep the (always-correct) f32 path there.
        if "v5" in _device_kind():
            return jnp.float32
        return dt
    return jnp.float32


def _row_tile(rows: int, row_bytes: int, sublane: int, target_bytes: int) -> int:
    """Row-tile: multiple of `sublane`, targeting ~target_bytes of x per step."""
    tn = max(1, target_bytes // max(row_bytes, 1))
    tn = max(sublane, (tn // sublane) * sublane)
    return rows if tn >= rows else tn


def _scale_2d(x2: jax.Array, g_row: jax.Array, donate_x: bool = False) -> jax.Array:
    """y2 = x2 * g_row, g_row broadcast over rows.  x2: (R, W), g_row: (W,)."""
    R, W = x2.shape
    dtype = x2.dtype
    itemsize = jnp.dtype(dtype).itemsize
    sublane = max(8, 32 // max(itemsize, 1))
    target_bytes, vmem_limit = _budgets()

    # Channel tile: prefer full rows -> one contiguous HBM DMA per grid step and
    # a gamma block whose index is constant along the row axis (stays resident).
    row_slab = sublane * W * itemsize
    if row_slab <= target_bytes:
        td = W
    elif W % 128 != 0 and 4 * row_slab <= vmem_limit:
        td = W  # oversized but still VMEM-safe; avoids masked channel blocks
    else:
        # Split channels into large lane-dense chunks.  If W % 128 != 0 the last
        # channel block is ragged and Pallas masks the out-of-bounds lanes.
        td = (target_bytes // (sublane * itemsize)) // 128 * 128
        td = max(128, min(td, _round_up(W, 128)))

    tn = _row_tile(R, td * itemsize, sublane, target_bytes)
    # v7x has 2 TensorCores: give the leading "parallel" axis >= 2 blocks so both
    # cores (and their DMA issue capacity) get work.
    if R > sublane and pl.cdiv(R, tn) < 2:
        tn = max(sublane, _round_up(pl.cdiv(R, 2), sublane))

    grid = (pl.cdiv(R, tn), pl.cdiv(W, td))
    g2 = g_row.reshape(1, W)

    extra = {}
    if donate_x:
        # Emulates PyTorch inplace=True: reuse a donated x buffer for the output.
        extra["input_output_aliases"] = {0: 0}

    return pl.pallas_call(
        _layer_scale_kernel,
        out_shape=jax.ShapeDtypeStruct((R, W), dtype),
        grid_spec=pl.GridSpec(
            grid=grid,
            in_specs=[
                pl.BlockSpec((tn, td), lambda i, j: (i, j)),
                pl.BlockSpec((1, td), lambda i, j: (0, j)),  # gamma chunk j
            ],
            out_specs=pl.BlockSpec((tn, td), lambda i, j: (i, j)),
        ),
        compiler_params=pltpu.CompilerParams(
            dimension_semantics=("parallel", "parallel"),
            vmem_limit_bytes=vmem_limit,
        ),
        **extra,
    )(x2, g2)


def layer_scale(x: jax.Array, gamma: jax.Array, donate_x: bool = False) -> jax.Array:
    """LayerScale forward: y = x * gamma, gamma broadcast over the last dim of x."""
    orig_shape = x.shape
    D = orig_shape[-1]
    assert gamma.shape == (D,), f"gamma must have shape ({D},), got {gamma.shape}"

    lead = 1
    for s in orig_shape[:-1]:
        lead *= s
    total = lead * D
    if total == 0:
        return x

    cdt = _compute_dtype(x.dtype)
    g = gamma.astype(cdt)

    if D < 128:
        # Lane-packing: view the data with lane axis C = lcm(D, 128) so stores are
        # dense 128-multiples and the gamma period is aligned per packed row.
        # Only taken when it needs no wrapper-side pad/slice (those would add full
        # extra HBM passes over x and the output).
        C = (D * 128) // math.gcd(D, 128)
        if total % C == 0:
            rows = total // C
            out = _scale_2d(x.reshape(rows, C), jnp.tile(g, C // D), donate_x)
            return out.reshape(orig_shape)
        # Ragged total: fall through to the direct path -- masked stores for D<128,
        # but zero extra HBM read/write of x.

    out = _scale_2d(x.reshape(lead, D), g, donate_x)
    return out.reshape(orig_shape)


if __name__ == "__main__":
    key = jax.random.PRNGKey(0)
    init_values = 1e-5
    k1, k2, k3, k4, k5 = jax.random.split(key, 5)

    def run_and_check(x, gamma, rtol, atol, tag):
        y = jax.block_until_ready(layer_scale(x, gamma))
        y_ref = (x.astype(jnp.float32) * gamma.astype(jnp.float32)).astype(x.dtype)
        assert y.shape == x.shape and y.dtype == x.dtype, f"shape/dtype: {tag}"
        assert jnp.allclose(y.astype(jnp.float32), y_ref.astype(jnp.float32),
                            rtol=rtol, atol=atol), f"mismatch: {tag}"

    # 1) D < 128, total divisible by lcm(D, 128) -> lane-packed path.
    D = 32
    run_and_check(jax.random.normal(k1, (2, 8, D), jnp.float32),
                  init_values * jnp.ones((D,), jnp.float32), 1e-6, 1e-6, "packed D=32")

    # 2) D multiple of 128 -> full-row tiles, >= 2 row blocks (both v7x cores).
    D = 256
    run_and_check(jax.random.normal(k2, (2, 8, D), jnp.float32),
                  init_values * jnp.ones((D,), jnp.float32), 1e-6, 1e-6, "full-row D=256")

    # 3) D < 128 with ragged total -> direct path (no pad/slice HBM copies).
    D = 32
    run_and_check(jax.random.normal(k3, (2, 3, D), jnp.float32),
                  init_values * jnp.ones((D,), jnp.float32), 1e-6, 1e-6, "ragged D=32")

    # 4) D >= 128, not a multiple of 128 -> full-row block with td = D.
    D = 192
    run_and_check(jax.random.normal(k4, (2, 8, D), jnp.float32),
                  init_values * jnp.ones((D,), jnp.float32), 1e-6, 1e-6, "odd D=192")

    # 5) bf16 input -> native 16-bit multiply on v6e/v7x (f32 path on v5).
    D = 256
    run_and_check(jax.random.normal(k5, (2, 8, D), jnp.bfloat16),
                  init_values * jnp.ones((D,), jnp.float32), 2e-2, 1e-8, "bf16 D=256")

    print("KERNEL_OK")
</pallas_src>

<mosaic_0001>
module attributes {stable_mosaic.version = 11 : i64} {
  func.func @_layer_scale_kernel(%arg0: i32, %arg1: i32, %arg2: memref<4x128xf32, #tpu.memory_space<vmem>>, %arg3: memref<1x128xf32, #tpu.memory_space<vmem>>, %arg4: memref<4x128xf32, #tpu.memory_space<vmem>>) attributes {dimension_semantics = [#tpu.dimension_semantics<parallel>, #tpu.dimension_semantics<parallel>], iteration_bounds = array<i64: 1, 1>, scalar_prefetch = 0 : i64, scratch_operands = 0 : i64, tpu.core_type = #tpu.core_type<tc>, window_params = [{transform_indices = @transform_0, window_bounds = array<i64: 4, 128>}, {transform_indices = @transform_1, window_bounds = array<i64: 1, 128>}, {transform_indices = @transform_2, window_bounds = array<i64: 4, 128>}]} {
    %c0 = arith.constant 0 : index
    %c0_0 = arith.constant 0 : index
    %0 = vector.load %arg3[%c0, %c0_0] : memref<1x128xf32, #tpu.memory_space<vmem>>, vector<1x128xf32>
    %c0_1 = arith.constant 0 : index
    %c0_2 = arith.constant 0 : index
    %1 = vector.load %arg2[%c0_1, %c0_2] : memref<4x128xf32, #tpu.memory_space<vmem>>, vector<4x128xf32>
    %2 = vector.broadcast %0 : vector<1x128xf32> to vector<4x128xf32>
    %3 = arith.mulf %1, %2 : vector<4x128xf32>
    %c0_3 = arith.constant 0 : index
    %c0_4 = arith.constant 0 : index
    %4 = vector.load %arg4[%c0_3, %c0_4] : memref<4x128xf32, #tpu.memory_space<vmem>>, vector<4x128xf32>
    tpu.vector_store %arg4[%c0_3, %c0_4], %3 {strides = array<i32>} : memref<4x128xf32, #tpu.memory_space<vmem>>, vector<4x128xf32>,
    return
  }
  func.func @transform_0(%arg0: i32, %arg1: i32) -> (i32, i32) {
    %c0_i32 = arith.constant 0 : i32
    return %arg0, %arg1 : i32, i32
  }
  func.func @transform_1(%arg0: i32, %arg1: i32) -> (i32, i32) {
    %c0_i32 = arith.constant 0 : i32
    %c0_i32_0 = arith.constant 0 : i32
    return %c0_i32, %arg1 : i32, i32
  }
  func.func @transform_2(%arg0: i32, %arg1: i32) -> (i32, i32) {
    %c0_i32 = arith.constant 0 : i32
    return %arg0, %arg1 : i32, i32
  }
}

</mosaic_0001>

<bundles_post_ra>
// kernel: tpu_custom_call.1
= control target key start
LH: loop header
LB: loop body
LE: loop exit
PB: predicated region body
PF: predicated region fallthrough
CT: control target
= control target key end

     0   :  { %7 = vsyncpa [#allocation3], 0  ;;  %s174_s0 = inlined_call_operand.hbm [shape: f32[4,128], index: 0, kind: input, shape index: {}]   ;;  %s175_s1 = inlined_call_operand.hbm [shape: f32[1,128], index: 1, kind: input, shape index: {}]   ;;  %s176_s2 = inlined_call_operand.hbm [shape: f32[4,128], index: 2, kind: output, shape index: {}]  }
   0x1   :  { %8 = vsyncpa [#allocation6], 0 }
   0x2   :  { %9 = vsyncpa [#allocation4], 0  ;;  %s15_s11 = sshll.u32 %s174_s0, 4  ;;  %s147_s12 = smov [#allocation2]   ;;  %s16_s11 = int_to_ptr.hbm [resolvable:$true] %s15_s11 }
   0x3   :  { %s17_s13 = sshll.u32 %s147_s12, 4  ;;  %s26_s16 = sshll.u32 %s175_s1, 4  ;;  %s18_s13 = int_to_ptr.vmem [resolvable:$true] %s17_s13  ;;  %s27_s16 = int_to_ptr.hbm [resolvable:$true] %s26_s16 }
   0x4   :  { %20 = dma.hbm_to_vmem [thread:$0]  %s16_s11, 64, %s18_s13, [#allocation3]  }
   0x5   :  { %s148_s17 = smov [#allocation5]  }
   0x6   :  { %s28_s18 = sshll.u32 %s148_s17, 4  ;;  %s29_s18 = int_to_ptr.vmem [resolvable:$true] %s28_s18 }
   0x7   :  { %31 = dma.hbm_to_vmem [thread:$0]  %s27_s16, 16, %s29_s18, [#allocation6]  }
   0x8   :  { %141 = dma.done.wait [#allocation3], 64  }
   0x9   :  { %142 = vsyncadd [#allocation3], 4294967232 }
   0xa   :  { %143 = dma.done.wait [#allocation6], 16  }
   0xb   :  { %144 = vsyncadd [#allocation6], 4294967280  ;;  %s149_s19 = smov [#allocation7]   ;;  %s54_s22 = sshll.u32 %s176_s2, 4  ;;  %v41_v0 = vld [vmem:[#allocation2] sm:$0xf]  ;;  %s55_s22 = int_to_ptr.hbm [resolvable:$true] %s54_s22 }
   0xc   :  { %s52_s0 = sshll.u32 %s149_s19, 4  ;;  %v68_v1 = vld [vmem:[#allocation5] ss:$0 sm:$0xff]  ;;  %s53_s0 = int_to_ptr.vmem [resolvable:$true] %s52_s0 }
   0xd   :  { %v45_v2 = vmul.f32 %v68_v1, %v41_v0 }
   0xf   :  { %46 = vst [vmem:[#allocation7] sm:$0xf] %v45_v2 }
  0x10   :  { %57 = dma.vmem_to_hbm [thread:$0]  %s53_s0, 64, %s55_s22, [#allocation4]  }
  0x11   :  { %145 = dma.done.wait [#allocation4], 64  }
  0x12   :  { %146 = vsyncadd [#allocation4], 4294967232 }
  0x13   :  { %62 = vsyncpa [#allocation3], 1 }
  0x14   :  { %63 = vsyncpa [#allocation6], 1 }
  0x15   :  { %64 = vsyncpa [#allocation4], 1 }

</bundles_post_ra>
